<compile_context>
chip_gen: v7x
topology: tpu7x:2x2x1
jax: 0.10.0
libtpu: 0.0.40
codegen_flags: <defaults>
</compile_context>

<pallas_src>
import jax
import jax.numpy as jnp
from jax.experimental import pallas as pl
from jax.experimental.pallas import tpu as pltpu


# Combined (input + output) bytes per grid step.  Measured tile sweeps plateau
# at ~85-86% of HBM roofline past ~1-4 MiB, so there is no point going bigger.
_DEFAULT_BLOCK_BUDGET = 4 * 1024 * 1024
# Explicit scoped-VMEM limit: double-buffered in+out stays well below this,
# but setting it avoids surprises from v5e's 16 MiB scoped default when lane
# padding inflates the nominal footprint.
_VMEM_LIMIT_BYTES = 32 * 1024 * 1024


def _round_up(x: int, m: int) -> int:
    return ((x + m - 1) // m) * m


def _sublane(dtype) -> int:
    # Sublane packing of one 32-bit vreg row for this dtype.
    return {4: 8, 2: 16, 1: 32}.get(jnp.dtype(dtype).itemsize, 8)


def _block_budget_bytes() -> int:
    # Generation-aware cap: v7x has only 64 MiB VMEM per TensorCore (vs
    # 128 MiB on v5e/v6e); keep the double-buffered in+out footprint far
    # under physical capacity on every generation.
    try:
        vmem = pltpu.get_tpu_info().vmem_capacity_bytes
    except Exception:  # non-TPU backend / older runtime: assume v7x (smallest)
        vmem = 64 * 1024 * 1024
    return max(1024, min(_DEFAULT_BLOCK_BUDGET, vmem // 16))


def _copy_flat_kernel(x_ref, o_ref):
    # Lane-dense copy of (TB, TL) blocks of the row-flattened (n*c, h*w) view.
    o_ref[...] = x_ref[...]


def _copy_crop_w_kernel(x_ref, o_ref):
    # Blocks: x_ref (TB, TH, W_blk), o_ref (TB, TH, W_out).  The H chomp is
    # already handled by the grid/BlockSpec; only the static lane crop of the
    # last dim remains (an identity copy when the input spec already crops W).
    o_ref[...] = x_ref[..., : o_ref.shape[-1]]


def chomp2d(x, chomp_size):
    """Pallas equivalent of PyTorch Chomp2d.forward (NCHW causal-pad removal)."""
    ch, cw = int(chomp_size[0]), int(chomp_size[1])
    n, c, h, w = x.shape
    h_out, w_out = h - ch, w - cw
    if h_out <= 0 or w_out <= 0:
        # Degenerate crop: nothing left to copy.
        return jnp.zeros((n, c, max(h_out, 0), max(w_out, 0)), x.dtype)

    b = n * c                      # collapse batch/channel; crop touches H, W only
    dtype = jnp.dtype(x.dtype)
    itemsize = dtype.itemsize
    sub = _sublane(dtype)
    budget = _block_budget_bytes()

    # ------------------------------------------------------------------
    # Fast path: H-only chomp.  The kept region of each (n, c) plane is a
    # contiguous prefix of its flattened H*W elements, so copy it as a
    # lane-dense 2D (b, h*w) -> (b, h_out*w) slab.
    # ------------------------------------------------------------------
    if cw == 0:
        l_in, l_out = h * w, h_out * w
        x2 = x.reshape(b, l_in)

        tl_full = _round_up(l_out, 128)
        # Ensure even a sub-row-tall block stays inside the budget.
        tl_max = max(128, (budget // (2 * itemsize * sub)) // 128 * 128)
        tl = min(tl_full, tl_max)

        row_bytes = 2 * tl * itemsize          # in + out, lane-padded
        tb_budget = max(1, budget // row_bytes)
        if tb_budget >= b:
            tb = b                             # full batch (== full dim, legal)
        else:
            tb = min(b, max(sub, (tb_budget // sub) * sub))

        n_l = pl.cdiv(l_out, tl)
        if n_l == 1 and tb == b and b >= 2 * sub:
            # Give v7x's two TensorCores at least two grid steps to shard.
            tb = max(sub, ((b // 2) // sub) * sub)

        grid = (pl.cdiv(b, tb), n_l)
        out2 = pl.pallas_call(
            _copy_flat_kernel,
            out_shape=jax.ShapeDtypeStruct((b, l_out), x.dtype),
            grid_spec=pltpu.PrefetchScalarGridSpec(
                num_scalar_prefetch=0,
                grid=grid,
                in_specs=[pl.BlockSpec((tb, tl), lambda i, j: (i, j))],
                out_specs=pl.BlockSpec((tb, tl), lambda i, j: (i, j)),
            ),
            compiler_params=pltpu.CompilerParams(
                dimension_semantics=("parallel", "parallel"),
                vmem_limit_bytes=_VMEM_LIMIT_BYTES,
            ),
        )(x2)
        return out2.reshape(n, c, h_out, w)

    # ------------------------------------------------------------------
    # General path: H chomp via the grid, W chomp via the store-side slice
    # (or via the input BlockSpec too when w_out is 128-lane aligned).
    # TODO(synk): for very narrow W (w_out << 128) the copy is lane-sparse;
    # the real fix is fusing the chomp into the producer conv's out_spec.
    # ------------------------------------------------------------------
    x3 = x.reshape(b, h, w)

    crop_in_w = (w_out % 128 == 0)             # input DMA can skip chomped cols
    w_blk_in = w_out if crop_in_w else w
    w_pad_in = _round_up(w_blk_in, 128)
    w_pad_out = _round_up(w_out, 128)
    row_bytes = (w_pad_in + w_pad_out) * itemsize   # per padded H row, per plane

    th_full = _round_up(h_out, sub)
    th_max = max(sub, (budget // row_bytes) // sub * sub)
    th = min(th_full, th_max)

    blk_bytes_one = th * row_bytes             # padded block bytes per plane
    tb_budget = max(1, budget // blk_bytes_one)
    # Keep >= ~4 steps along the leading "parallel" axis so v7x's 2 TCs stay fed.
    tb_cap = max(1, b // 4) if b >= 4 else 1
    tb = max(1, min(tb_budget, tb_cap))

    grid = (pl.cdiv(b, tb), pl.cdiv(h_out, th))

    out3 = pl.pallas_call(
        _copy_crop_w_kernel,
        out_shape=jax.ShapeDtypeStruct((b, h_out, w_out), x.dtype),
        grid_spec=pltpu.PrefetchScalarGridSpec(
            num_scalar_prefetch=0,
            grid=grid,
            in_specs=[pl.BlockSpec((tb, th, w_blk_in), lambda i, j: (i, j, 0))],
            out_specs=pl.BlockSpec((tb, th, w_out), lambda i, j: (i, j, 0)),
        ),
        compiler_params=pltpu.CompilerParams(
            dimension_semantics=("parallel", "parallel"),
            vmem_limit_bytes=_VMEM_LIMIT_BYTES,
        ),
    )(x3)
    return out3.reshape(n, c, h_out, w_out)


if __name__ == "__main__":
    key = jax.random.PRNGKey(0)
    k1, k2 = jax.random.split(key)

    # 1) Typical TCN padding-removal usage: NCHW input, chomp (2, 2).
    x = jax.random.normal(k1, (2, 4, 16, 16), dtype=jnp.float32)
    out = jax.block_until_ready(chomp2d(x, (2, 2)))
    ref = x[:, :, :14, :14]
    assert out.shape == (2, 4, 14, 14), out.shape
    assert jnp.array_equal(out, ref), "mismatch vs reference slice (2,2)"

    # 2) H-only chomp -> lane-dense flattened fast path.
    out_h = jax.block_until_ready(chomp2d(x, (2, 0)))
    ref_h = x[:, :, :14, :]
    assert out_h.shape == (2, 4, 14, 16), out_h.shape
    assert jnp.array_equal(out_h, ref_h), "mismatch vs reference slice (2,0)"

    # 3) w_out multiple of 128 -> input DMA also skips the chomped columns.
    x_wide = jax.random.normal(k2, (2, 4, 16, 130), dtype=jnp.float32)
    out_w = jax.block_until_ready(chomp2d(x_wide, (2, 2)))
    ref_w = x_wide[:, :, :14, :128]
    assert out_w.shape == (2, 4, 14, 128), out_w.shape
    assert jnp.array_equal(out_w, ref_w), "mismatch vs reference slice (wide)"

    print("KERNEL_OK")
</pallas_src>

<mosaic_0001>
module attributes {stable_mosaic.version = 11 : i64} {
  func.func @_copy_crop_w_kernel(%arg0: i32, %arg1: i32, %arg2: memref<2x16x16xf32, #tpu.memory_space<vmem>>, %arg3: memref<2x16x14xf32, #tpu.memory_space<vmem>>) attributes {dimension_semantics = [#tpu.dimension_semantics<parallel>, #tpu.dimension_semantics<parallel>], iteration_bounds = array<i64: 4, 1>, scalar_prefetch = 0 : i64, scratch_operands = 0 : i64, tpu.core_type = #tpu.core_type<tc>, window_params = [{transform_indices = @transform_0, window_bounds = array<i64: 2, 16, 16>}, {transform_indices = @transform_1, window_bounds = array<i64: 2, 16, 14>}]} {
    %c0 = arith.constant 0 : index
    %c0_0 = arith.constant 0 : index
    %c0_1 = arith.constant 0 : index
    %0 = vector.load %arg2[%c0, %c0_0, %c0_1] : memref<2x16x16xf32, #tpu.memory_space<vmem>>, vector<2x16x14xf32>
    %c0_2 = arith.constant 0 : index
    %c0_3 = arith.constant 0 : index
    %c0_4 = arith.constant 0 : index
    %1 = vector.load %arg3[%c0_2, %c0_3, %c0_4] : memref<2x16x14xf32, #tpu.memory_space<vmem>>, vector<2x16x14xf32>
    tpu.vector_store %arg3[%c0_2, %c0_3, %c0_4], %0 {strides = array<i32>} : memref<2x16x14xf32, #tpu.memory_space<vmem>>, vector<2x16x14xf32>,
    return
  }
  func.func @transform_0(%arg0: i32, %arg1: i32) -> (i32, i32, i32) {
    %c0_i32 = arith.constant 0 : i32
    %c0_i32_0 = arith.constant 0 : i32
    return %arg0, %arg1, %c0_i32 : i32, i32, i32
  }
  func.func @transform_1(%arg0: i32, %arg1: i32) -> (i32, i32, i32) {
    %c0_i32 = arith.constant 0 : i32
    %c0_i32_0 = arith.constant 0 : i32
    return %arg0, %arg1, %c0_i32 : i32, i32, i32
  }
}

</mosaic_0001>

<bundles_post_ra>
// kernel: tpu_custom_call.1
= control target key start
LH: loop header
LB: loop body
LE: loop exit
PB: predicated region body
PF: predicated region fallthrough
CT: control target
= control target key end

     0   :  { %6 = vsyncpa [#allocation3], 0  ;;  %s570_s0 = inlined_call_operand.hbm [shape: f32[8,16,16], index: 0, kind: input, shape index: {}]   ;;  %s571_s1 = inlined_call_operand.vmem [shape: f32[8,14,14], index: 1, kind: output, shape index: {}]  }
   0x1   :  { %8 = vsyncpa [#allocation3 + $0x1], 0  ;;  %s447_s6 = smov 0   ;;  %s449_s7 = smov 0  }
   0x2   :  { %s451_s8 = smov 0   ;;  %s453_s9 = smov 0  }
   0x3   :  { %s455_s10 = smov 0   ;;  %s457_s11 = smov 0  }
   0x4 LB: > { %s277_s12 = sadd.s32 4294967295, %s432_s11   ;;  %s26_s13 = sadd.s32 1, %s428_s10  ;;  %s432_s11 = sphi %s457_s11, %s14_s11   ;;  %s428_s10 = sphi %s455_s10, %s579_s10   ;;  %s424_s9 = sphi %s453_s9, %s578_s9   ;;  %s420_s8 = sphi %s451_s8, %s577_s8   ;;  %s416_s7 = sphi %s449_s7, %s576_s7   ;;  %s412_s6 = sphi %s447_s6, %s575_s6  }
   0x5   : > { %p28_p0 = scmp.ge.s32.totalorder %s26_s13, 4  ;;  %s35_s14 = sadd.s32 1, %s420_s8 }
   0x6   : > { %p42_p1 = scmp.ne.s32.totalorder %s420_s8, %s416_s7  ;;  %p43_p2 = scmp.eq.s32.totalorder %s432_s11, 0 }
   0x7   : > { %s581_s13 = smov (%p28_p0, %s26_s13), 0  ;;  %p48_p4 = scmp.ne.s32.totalorder %s416_s7, %s412_s6 }
   0x8   : > { %p483_p3 = por %p43_p2, %p42_p1  ;;  %s30_s16 = ssub.s32 %s428_s10, %s581_s13 }
   0x9   : > { %p49_p5 = scmp.eq.s32.totalorder %s277_s12, 0  ;;  %p33_p6 = scmp.eq.s32.totalorder %s30_s16, 0 }
   0xa   : > { %p301_p8 = scmp.lt.s32.totalorder %s432_s11, 4  ;;  %s100_s19 = sand.u32 1, %s420_s8  }
   0xb   : > { %p490_p7 = por %p49_p5, %p48_p4  ;;  %s293_s20 = sshll.u32 %s428_s10, 9 }
   0xc   : > { %s496_s18 = scalar_select %p33_p6, %s420_s8, %s35_s14  }
   0xd   : > { %s281_s21 = sshll.u32 %s100_s19, 5  ;;  %s503_s24 = scalar_lea.hbm %s570_s0, %s293_s20 }
   0xe   : > { %s104_s25 = scalar_lea.vmem [#allocation2], %s281_s21  ;;  %p507_p9 = pnand %p301_p8, %p483_p3 }
   0xf   : > { %s114_s26 = sshll.u32 %s104_s25, 4  ;;  %s513_s28 = scalar_lea.sflag [#allocation3], %s100_s19  ;;  %s511_s26 = int_to_ptr.vmem [resolvable:$true] %s114_s26 }
  0x10   : > { %s352_s29 = scalar_lea.hbm %s503_s24, 512  ;;  %p354_p11 = pneg %p507_p9 }
  0x11   : > { %p353_p10 = scmp.ne.s32.totalorder %s503_s24, %s352_s29  ;;  %s357_s3 = scalar_lea.hbm %s570_s0, 2048 }
  0x12   : > { %p358_p0 = scmp.lt.u32.totalorder %s503_s24, %s570_s0  ;;  %p359_p1 = scmp.lt.u32.totalorder %s357_s3, %s352_s29 }
  0x13   : > { %p355_p12 = pnand %p354_p11, %p353_p10  ;;  %p361_p3 = scmp.lt.u32.totalorder %s352_s29, %s503_s24 }
  0x14   : > { %p360_p2 = por %p359_p1, %p358_p0 }
  0x15   : > { %p356_p13 = pneg %p355_p12 }
  0x16   : > { %p362_p4 = por %p361_p3, %p360_p2 }
  0x18   : > { %p363_p5 = pnand %p362_p4, %p356_p13 }
  0x1a   : > { %366 = shalt.err (!%p363_p5)
}
  0x1b   : > { %s367_s6 = scalar_lea.vmem %s511_s26, 512  ;;  %s434_s12 = smov [#allocation2]  }
  0x1c   : > { %p368_p6 = scmp.ne.s32.totalorder %s511_s26, %s367_s6  ;;  %s372_s14 = sshll.u32 %s434_s12, 4  ;;  %s373_s14 = int_to_ptr.vmem [resolvable:$false] %s372_s14 }
  0x1d   : > { %s374_s15 = scalar_lea.vmem %s373_s14, 1024  ;;  %p375_p12 = scmp.lt.s32.totalorder %s511_s26, %s373_s14 }
  0x1e   : > { %p370_p8 = pnand %p368_p6, %p354_p11  ;;  %p376_p0 = scmp.lt.s32.totalorder %s374_s15, %s367_s6 }
  0x20   : > { %p371_p10 = pneg %p370_p8  ;;  %p377_p1 = por %p376_p0, %p375_p12 }
  0x22   : > { %p378_p2 = pnand %p377_p1, %p371_p10 }
  0x24   : > { %381 = shalt.err (!%p378_p2)
}
  0x25   : > { %s435_s16 = smov 128   ;;  %s436_s19 = smov 8  }
  0x26   : > { %300 = dma.hbm_to_vmem [thread:$0]  (!%p507_p9), %s503_s24, 512, %s511_s26, %s513_s28, %s435_s16, %s435_s16, %s436_s19  }
  0x27   : > { %p285_p11 = scmp.ge.s32.totalorder %s432_s11, 1  ;;  %p122_p13 = scmp.lt.s32.totalorder %s432_s11, 5 }
  0x29   : > { %p123_p3 = pnand %p285_p11, %p122_p13 }
  0x2a   : > { %s128_s20 = sand.u32 (!%p123_p3), 1, %s416_s7  }
  0x2b   : > { %126 = sbr.rel (%p123_p3) target bundleno = 59 (0x3b), region = 24  ;;  %s286_s21 = sshll.u32 (!%p123_p3), %s128_s20, 5 }
  0x2c   : > { %s129_s22 = scalar_lea.sflag (!%p123_p3), [#allocation3], %s128_s20  ;;  %s132_s23 = scalar_lea.vmem (!%p123_p3), [#allocation2], %s286_s21 }
  0x32   : > { %407 = dma.done.wait (%p490_p7), %s129_s22, 512  }
  0x33   : > { %409 = vsyncadd (%p490_p7), %s129_s22, 4294966784  ;;  %s287_s25 = sshll.u32 %s424_s9, 1  ;;  %vm174_vm0 = vcmask 113664   ;;  %v170_v0 = vld [vmem:[%s132_s23] sm:$0xff]  ;;  %v171_v1 = vld [vmem:[%s132_s23 + $0x8] sm:$0xff] }
  0x34   : > { %p160_p4 = scmp.lt.s32.totalorder %s287_s25, 7  ;;  %v172_v2 = vld [vmem:[%s132_s23 + $0x10] sm:$0xff]  ;;  %v173_v3 = vld [vmem:[%s132_s23 + $0x18] sm:$0xff] }
  0x36   : > { %s583_s25 = smov (!%p160_p4, %s287_s25), 7 }
  0x37   : > { %s294_s24 = sshll.u32 %s583_s25, 4 }
  0x38   : > { %s167_s28 = scalar_lea.vmem %s571_s1, %s294_s24 }
  0x39   : > { %175 = vst.msk [vmem:[%s167_s28] sm:$0xff] %vm174_vm0, %v170_v0  ;;  %176 = vst.msk [vmem:[%s167_s28 + $0x8] sm:$0xff] %vm174_vm0, %v171_v1 }
  0x3a   : > { %177 = vst.msk [vmem:[%s167_s28 + $0x10] sm:$0xff] %vm174_vm0, %v172_v2  ;;  %178 = vst.msk [vmem:[%s167_s28 + $0x18] sm:$0xff] %vm174_vm0, %v173_v3 }
  0x3b PF: > { %s14_s11 = sadd.s32 1, %s432_s11   ;;  %s575_s6 = smov %s416_s7 }
  0x3c   : > { %p11_p7 = scmp.ge.s32.totalorder %s14_s11, 6   ;;  %s576_s7 = smov %s420_s8 }
  0x3d   : > { %s577_s8 = smov %s496_s18  ;;  %s578_s9 = smov %s428_s10 }
  0x3e   : > { %s579_s10 = smov %s581_s13  ;;  %13 = sbr.rel (!%p11_p7) target bundleno = 4 (0x4), region = 64 }
  0x45   :  { %212 = vsyncpa [#allocation3], 1 }
  0x46   :  { %214 = vsyncpa [#allocation3 + $0x1], 1 }

</bundles_post_ra>
